<compile_context>
chip_gen: v6e
topology: v6e:2x2x1
jax: 0.10.0
libtpu: 0.0.40
codegen_flags: <defaults>
</compile_context>

<pallas_src>
import functools

import jax
import jax.numpy as jnp
from jax.experimental import pallas as pl
from jax.experimental.pallas import tpu as pltpu


def _round_up(n, m):
    return (n + m - 1) // m * m


def vae_kernel(x_ref, eps_ref,
               w1_ref, b1_ref,
               wml_ref, bml_ref,
               w3_ref, b3_ref,
               w4_ref, b4_ref,
               recon_ref, mulv_ref,
               *, zp):
    x = x_ref[...]

    # encode: h1 = relu(x @ W1 + b1)
    h1 = jnp.dot(x, w1_ref[...], preferred_element_type=jnp.float32) + b1_ref[...]
    h1 = jnp.maximum(h1, 0.0)

    # fused mu|logvar head: one matmul, columns [0:zp) = mu, [zp:2*zp) = logvar
    mulv = jnp.dot(h1, wml_ref[...], preferred_element_type=jnp.float32) + bml_ref[...]
    mu = mulv[:, :zp]
    logvar = mulv[:, zp:]

    # reparameterize (training mode): z = mu + eps * exp(0.5 * logvar)
    std = jnp.exp(0.5 * logvar)
    z = mu + eps_ref[...] * std

    # decode: recon = relu(z @ W3 + b3) @ W4 + b4   (no final sigmoid in this module)
    h3 = jnp.dot(z, w3_ref[...], preferred_element_type=jnp.float32) + b3_ref[...]
    h3 = jnp.maximum(h3, 0.0)
    recon = jnp.dot(h3, w4_ref[...], preferred_element_type=jnp.float32) + b4_ref[...]

    recon_ref[...] = recon
    mulv_ref[...] = mulv


def init_params(key, input_dim, zdim, hidden=20):
    """Deterministic synthetic init. Weights stored as (in, out) (torch-equivalent y = x@W + b)."""
    def linear(k, fan_in, fan_out):
        kw, kb = jax.random.split(k)
        bound = 1.0 / jnp.sqrt(fan_in)
        w = jax.random.uniform(kw, (fan_in, fan_out), jnp.float32, -bound, bound)
        b = jax.random.uniform(kb, (1, fan_out), jnp.float32, -bound, bound)
        return w, b

    k1, k21, k22, k3, k4 = jax.random.split(key, 5)
    w1, b1 = linear(k1, input_dim, hidden)
    w21, b21 = linear(k21, hidden, zdim)
    w22, b22 = linear(k22, hidden, zdim)
    w3, b3 = linear(k3, zdim, hidden)
    w4, b4 = linear(k4, hidden, input_dim)
    return dict(w1=w1, b1=b1, w21=w21, b21=b21, w22=w22, b22=b22,
                w3=w3, b3=b3, w4=w4, b4=b4)


def pack_params(params, input_dim, zdim, hidden=20):
    """Pad all weights once to lane-aligned shapes and fuse the mu/logvar head."""
    dp = _round_up(input_dim, 128)
    hp = _round_up(hidden, 128)
    zp = _round_up(zdim, 128)

    def pad2(a, rows, cols):
        return jnp.pad(a, ((0, rows - a.shape[0]), (0, cols - a.shape[1])))

    w1 = pad2(params["w1"], dp, hp)
    b1 = pad2(params["b1"], 1, hp)

    # Fused mu|logvar head: (hp, 2*zp); mu block in cols [0:zp), logvar in [zp:2*zp).
    wml = jnp.zeros((hp, 2 * zp), jnp.float32)
    wml = wml.at[:hidden, :zdim].set(params["w21"])
    wml = wml.at[:hidden, zp:zp + zdim].set(params["w22"])
    bml = jnp.zeros((1, 2 * zp), jnp.float32)
    bml = bml.at[:, :zdim].set(params["b21"][0])
    bml = bml.at[:, zp:zp + zdim].set(params["b22"][0])

    w3 = pad2(params["w3"], zp, hp)
    b3 = pad2(params["b3"], 1, hp)
    w4 = pad2(params["w4"], hp, dp)
    b4 = pad2(params["b4"], 1, dp)

    return dict(w1=w1, b1=b1, wml=wml, bml=bml, w3=w3, b3=b3, w4=w4, b4=b4,
                input_dim=input_dim, zdim=zdim, hidden=hidden,
                dp=dp, hp=hp, zp=zp)


def vae_forward(x, eps, packed, *, tm_max=512):
    """x: (..., input_dim)-flattenable array; eps: (N, zdim) standard normals.

    Returns (recon (N, input_dim), mu (N, zdim), logvar (N, zdim)).
    """
    d, z = packed["input_dim"], packed["zdim"]
    dp, zp = packed["dp"], packed["zp"]

    x2d = x.reshape(-1, d).astype(jnp.float32)
    n = x2d.shape[0]

    # Row tile: as large as reasonable (amortizes per-step overhead), sublane-aligned.
    tm = min(tm_max, _round_up(n, 8))
    grid_m = pl.cdiv(n, tm)
    n_pad = grid_m * tm

    # Pad rows (zeros) and lanes (zeros) once in the wrapper so every kernel
    # operand / store is a full (8,128)-aligned tile.
    xp = jnp.zeros((n_pad, dp), jnp.float32).at[:n, :d].set(x2d)
    epsp = jnp.zeros((n_pad, zp), jnp.float32).at[:n, :z].set(eps.astype(jnp.float32))

    def row_spec(cols):
        return pl.BlockSpec((tm, cols), lambda i: (i, 0))

    def const_spec(arr):
        return pl.BlockSpec(arr.shape, lambda i: (0, 0))

    kernel = functools.partial(vae_kernel, zp=zp)

    recon_p, mulv_p = pl.pallas_call(
        kernel,
        grid=(grid_m,),
        in_specs=[
            row_spec(dp),                 # x rows
            row_spec(zp),                 # eps rows (same row blocking as x)
            const_spec(packed["w1"]), const_spec(packed["b1"]),
            const_spec(packed["wml"]), const_spec(packed["bml"]),
            const_spec(packed["w3"]), const_spec(packed["b3"]),
            const_spec(packed["w4"]), const_spec(packed["b4"]),
        ],
        out_specs=(row_spec(dp), row_spec(2 * zp)),
        out_shape=(
            jax.ShapeDtypeStruct((n_pad, dp), jnp.float32),
            jax.ShapeDtypeStruct((n_pad, 2 * zp), jnp.float32),
        ),
        compiler_params=pltpu.CompilerParams(
            dimension_semantics=("parallel",),
        ),
    )(xp, epsp,
      packed["w1"], packed["b1"],
      packed["wml"], packed["bml"],
      packed["w3"], packed["b3"],
      packed["w4"], packed["b4"])

    recon = recon_p[:n, :d]
    mu = mulv_p[:n, :z]
    logvar = mulv_p[:n, zp:zp + z]
    return recon, mu, logvar


def vae_reference(x, eps, params):
    """Pure-JAX reference for correctness check (unpadded params)."""
    input_dim = params["w1"].shape[0]
    x2d = x.reshape(-1, input_dim).astype(jnp.float32)
    h1 = jnp.maximum(x2d @ params["w1"] + params["b1"], 0.0)
    mu = h1 @ params["w21"] + params["b21"]
    logvar = h1 @ params["w22"] + params["b22"]
    z = mu + eps * jnp.exp(0.5 * logvar)
    h3 = jnp.maximum(z @ params["w3"] + params["b3"], 0.0)
    recon = h3 @ params["w4"] + params["b4"]
    return recon, mu, logvar


if __name__ == "__main__":
    input_dim = 16
    zdim = 8

    key = jax.random.PRNGKey(0)
    k_param, k_x, k_eps, k_x2, k_eps2 = jax.random.split(key, 5)

    params = init_params(k_param, input_dim, zdim)
    packed = pack_params(params, input_dim, zdim)

    # Small case: x with extra leading dims, flattened inside (matches x.view(-1, input_dim))
    x = jax.random.normal(k_x, (2, 4, input_dim), jnp.float32)
    n_rows = 2 * 4
    eps = jax.random.normal(k_eps, (n_rows, zdim), jnp.float32)

    recon, mu, logvar = vae_forward(x, eps, packed)
    jax.block_until_ready((recon, mu, logvar))

    r_ref, mu_ref, lv_ref = vae_reference(x, eps, params)
    assert recon.shape == (n_rows, input_dim)
    assert mu.shape == (n_rows, zdim) and logvar.shape == (n_rows, zdim)
    assert jnp.allclose(recon, r_ref, atol=1e-5, rtol=1e-5)
    assert jnp.allclose(mu, mu_ref, atol=1e-5, rtol=1e-5)
    assert jnp.allclose(logvar, lv_ref, atol=1e-5, rtol=1e-5)

    # Larger case exercising multiple grid steps + row padding in the last tile.
    n2 = 300
    x2 = jax.random.normal(k_x2, (n2, input_dim), jnp.float32)
    eps2 = jax.random.normal(k_eps2, (n2, zdim), jnp.float32)
    recon2, mu2, lv2 = vae_forward(x2, eps2, packed, tm_max=128)
    jax.block_until_ready((recon2, mu2, lv2))
    r2_ref, mu2_ref, lv2_ref = vae_reference(x2, eps2, params)
    assert recon2.shape == (n2, input_dim)
    assert jnp.allclose(recon2, r2_ref, atol=1e-5, rtol=1e-5)
    assert jnp.allclose(mu2, mu2_ref, atol=1e-5, rtol=1e-5)
    assert jnp.allclose(lv2, lv2_ref, atol=1e-5, rtol=1e-5)

    print("KERNEL_OK")
</pallas_src>

<mosaic_0001>
module attributes {stable_mosaic.version = 11 : i64} {
  func.func @vae_kernel(%arg0: i32, %arg1: memref<8x128xf32, #tpu.memory_space<vmem>>, %arg2: memref<8x128xf32, #tpu.memory_space<vmem>>, %arg3: memref<128x128xf32, #tpu.memory_space<vmem>>, %arg4: memref<1x128xf32, #tpu.memory_space<vmem>>, %arg5: memref<128x256xf32, #tpu.memory_space<vmem>>, %arg6: memref<1x256xf32, #tpu.memory_space<vmem>>, %arg7: memref<128x128xf32, #tpu.memory_space<vmem>>, %arg8: memref<1x128xf32, #tpu.memory_space<vmem>>, %arg9: memref<128x128xf32, #tpu.memory_space<vmem>>, %arg10: memref<1x128xf32, #tpu.memory_space<vmem>>, %arg11: memref<8x128xf32, #tpu.memory_space<vmem>>, %arg12: memref<8x256xf32, #tpu.memory_space<vmem>>) attributes {dimension_semantics = [#tpu.dimension_semantics<parallel>], iteration_bounds = array<i64: 1>, scalar_prefetch = 0 : i64, scratch_operands = 0 : i64, tpu.core_type = #tpu.core_type<tc>, window_params = [{transform_indices = @transform_0, window_bounds = array<i64: 8, 128>}, {transform_indices = @transform_1, window_bounds = array<i64: 8, 128>}, {pipeline_mode = #tpu.pipeline_mode<synchronous>, transform_indices = @transform_2, window_bounds = array<i64: 128, 128>}, {pipeline_mode = #tpu.pipeline_mode<synchronous>, transform_indices = @transform_3, window_bounds = array<i64: 1, 128>}, {pipeline_mode = #tpu.pipeline_mode<synchronous>, transform_indices = @transform_4, window_bounds = array<i64: 128, 256>}, {pipeline_mode = #tpu.pipeline_mode<synchronous>, transform_indices = @transform_5, window_bounds = array<i64: 1, 256>}, {pipeline_mode = #tpu.pipeline_mode<synchronous>, transform_indices = @transform_6, window_bounds = array<i64: 128, 128>}, {pipeline_mode = #tpu.pipeline_mode<synchronous>, transform_indices = @transform_7, window_bounds = array<i64: 1, 128>}, {pipeline_mode = #tpu.pipeline_mode<synchronous>, transform_indices = @transform_8, window_bounds = array<i64: 128, 128>}, {pipeline_mode = #tpu.pipeline_mode<synchronous>, transform_indices = @transform_9, window_bounds = array<i64: 1, 128>}, {transform_indices = @transform_10, window_bounds = array<i64: 8, 128>}, {transform_indices = @transform_11, window_bounds = array<i64: 8, 256>}]} {
    %c0 = arith.constant 0 : index
    %c0_0 = arith.constant 0 : index
    %0 = vector.load %arg1[%c0, %c0_0] : memref<8x128xf32, #tpu.memory_space<vmem>>, vector<8x128xf32>
    %c0_1 = arith.constant 0 : index
    %c0_2 = arith.constant 0 : index
    %1 = vector.load %arg3[%c0_1, %c0_2] : memref<128x128xf32, #tpu.memory_space<vmem>>, vector<128x128xf32>
    %cst = arith.constant dense<0.000000e+00> : vector<8x128xf32>
    %2 = tpu.matmul %0, %1, %cst {dimension_numbers = #tpu.dot_dimension_numbers<[1], [0], [0], [1], [0, 0, 1, 1], [], []>} : vector<8x128xf32>, vector<128x128xf32>, vector<8x128xf32> -> vector<8x128xf32>
    %c0_3 = arith.constant 0 : index
    %c0_4 = arith.constant 0 : index
    %3 = vector.load %arg4[%c0_3, %c0_4] : memref<1x128xf32, #tpu.memory_space<vmem>>, vector<1x128xf32>
    %4 = vector.broadcast %3 : vector<1x128xf32> to vector<8x128xf32>
    %5 = arith.addf %2, %4 : vector<8x128xf32>
    %cst_5 = arith.constant 0.000000e+00 : f32
    %6 = vector.broadcast %cst_5 : f32 to vector<8x128xf32>
    %7 = arith.maximumf %5, %6 : vector<8x128xf32>
    %c0_6 = arith.constant 0 : index
    %c0_7 = arith.constant 0 : index
    %8 = vector.load %arg5[%c0_6, %c0_7] : memref<128x256xf32, #tpu.memory_space<vmem>>, vector<128x256xf32>
    %cst_8 = arith.constant dense<0.000000e+00> : vector<8x256xf32>
    %9 = tpu.matmul %7, %8, %cst_8 {dimension_numbers = #tpu.dot_dimension_numbers<[1], [0], [0], [1], [0, 0, 1, 1], [], []>} : vector<8x128xf32>, vector<128x256xf32>, vector<8x256xf32> -> vector<8x256xf32>
    %c0_9 = arith.constant 0 : index
    %c0_10 = arith.constant 0 : index
    %10 = vector.load %arg6[%c0_9, %c0_10] : memref<1x256xf32, #tpu.memory_space<vmem>>, vector<1x256xf32>
    %11 = vector.broadcast %10 : vector<1x256xf32> to vector<8x256xf32>
    %12 = arith.addf %9, %11 : vector<8x256xf32>
    %13 = vector.extract_strided_slice %12 {offsets = [0, 0], sizes = [8, 128], strides = [1, 1]} : vector<8x256xf32> to vector<8x128xf32>
    %14 = vector.extract_strided_slice %12 {offsets = [0, 128], sizes = [8, 128], strides = [1, 1]} : vector<8x256xf32> to vector<8x128xf32>
    %cst_11 = arith.constant 5.000000e-01 : f32
    %15 = vector.broadcast %cst_11 : f32 to vector<8x128xf32>
    %16 = arith.mulf %15, %14 : vector<8x128xf32>
    %17 = math.exp %16 : vector<8x128xf32>
    %c0_12 = arith.constant 0 : index
    %c0_13 = arith.constant 0 : index
    %18 = vector.load %arg2[%c0_12, %c0_13] : memref<8x128xf32, #tpu.memory_space<vmem>>, vector<8x128xf32>
    %19 = arith.mulf %18, %17 : vector<8x128xf32>
    %20 = arith.addf %13, %19 : vector<8x128xf32>
    %c0_14 = arith.constant 0 : index
    %c0_15 = arith.constant 0 : index
    %21 = vector.load %arg7[%c0_14, %c0_15] : memref<128x128xf32, #tpu.memory_space<vmem>>, vector<128x128xf32>
    %cst_16 = arith.constant dense<0.000000e+00> : vector<8x128xf32>
    %22 = tpu.matmul %20, %21, %cst_16 {dimension_numbers = #tpu.dot_dimension_numbers<[1], [0], [0], [1], [0, 0, 1, 1], [], []>} : vector<8x128xf32>, vector<128x128xf32>, vector<8x128xf32> -> vector<8x128xf32>
    %c0_17 = arith.constant 0 : index
    %c0_18 = arith.constant 0 : index
    %23 = vector.load %arg8[%c0_17, %c0_18] : memref<1x128xf32, #tpu.memory_space<vmem>>, vector<1x128xf32>
    %24 = vector.broadcast %23 : vector<1x128xf32> to vector<8x128xf32>
    %25 = arith.addf %22, %24 : vector<8x128xf32>
    %cst_19 = arith.constant 0.000000e+00 : f32
    %26 = vector.broadcast %cst_19 : f32 to vector<8x128xf32>
    %27 = arith.maximumf %25, %26 : vector<8x128xf32>
    %c0_20 = arith.constant 0 : index
    %c0_21 = arith.constant 0 : index
    %28 = vector.load %arg9[%c0_20, %c0_21] : memref<128x128xf32, #tpu.memory_space<vmem>>, vector<128x128xf32>
    %cst_22 = arith.constant dense<0.000000e+00> : vector<8x128xf32>
    %29 = tpu.matmul %27, %28, %cst_22 {dimension_numbers = #tpu.dot_dimension_numbers<[1], [0], [0], [1], [0, 0, 1, 1], [], []>} : vector<8x128xf32>, vector<128x128xf32>, vector<8x128xf32> -> vector<8x128xf32>
    %c0_23 = arith.constant 0 : index
    %c0_24 = arith.constant 0 : index
    %30 = vector.load %arg10[%c0_23, %c0_24] : memref<1x128xf32, #tpu.memory_space<vmem>>, vector<1x128xf32>
    %31 = vector.broadcast %30 : vector<1x128xf32> to vector<8x128xf32>
    %32 = arith.addf %29, %31 : vector<8x128xf32>
    %c0_25 = arith.constant 0 : index
    %c0_26 = arith.constant 0 : index
    %33 = vector.load %arg11[%c0_25, %c0_26] : memref<8x128xf32, #tpu.memory_space<vmem>>, vector<8x128xf32>
    tpu.vector_store %arg11[%c0_25, %c0_26], %32 {strides = array<i32>} : memref<8x128xf32, #tpu.memory_space<vmem>>, vector<8x128xf32>,
    %c0_27 = arith.constant 0 : index
    %c0_28 = arith.constant 0 : index
    %34 = vector.load %arg12[%c0_27, %c0_28] : memref<8x256xf32, #tpu.memory_space<vmem>>, vector<8x256xf32>
    tpu.vector_store %arg12[%c0_27, %c0_28], %12 {strides = array<i32>} : memref<8x256xf32, #tpu.memory_space<vmem>>, vector<8x256xf32>,
    return
  }
  func.func @transform_0(%arg0: i32) -> (i32, i32) {
    %c0_i32 = arith.constant 0 : i32
    %c0_i32_0 = arith.constant 0 : i32
    return %arg0, %c0_i32 : i32, i32
  }
  func.func @transform_1(%arg0: i32) -> (i32, i32) {
    %c0_i32 = arith.constant 0 : i32
    %c0_i32_0 = arith.constant 0 : i32
    return %arg0, %c0_i32 : i32, i32
  }
  func.func @transform_2(%arg0: i32) -> (i32, i32) {
    %c0_i32 = arith.constant 0 : i32
    %c0_i32_0 = arith.constant 0 : i32
    %c0_i32_1 = arith.constant 0 : i32
    return %c0_i32, %c0_i32_0 : i32, i32
  }
  func.func @transform_3(%arg0: i32) -> (i32, i32) {
    %c0_i32 = arith.constant 0 : i32
    %c0_i32_0 = arith.constant 0 : i32
    %c0_i32_1 = arith.constant 0 : i32
    return %c0_i32, %c0_i32_0 : i32, i32
  }
  func.func @transform_4(%arg0: i32) -> (i32, i32) {
    %c0_i32 = arith.constant 0 : i32
    %c0_i32_0 = arith.constant 0 : i32
    %c0_i32_1 = arith.constant 0 : i32
    return %c0_i32, %c0_i32_0 : i32, i32
  }
  func.func @transform_5(%arg0: i32) -> (i32, i32) {
    %c0_i32 = arith.constant 0 : i32
    %c0_i32_0 = arith.constant 0 : i32
    %c0_i32_1 = arith.constant 0 : i32
    return %c0_i32, %c0_i32_0 : i32, i32
  }
  func.func @transform_6(%arg0: i32) -> (i32, i32) {
    %c0_i32 = arith.constant 0 : i32
    %c0_i32_0 = arith.constant 0 : i32
    %c0_i32_1 = arith.constant 0 : i32
    return %c0_i32, %c0_i32_0 : i32, i32
  }
  func.func @transform_7(%arg0: i32) -> (i32, i32) {
    %c0_i32 = arith.constant 0 : i32
    %c0_i32_0 = arith.constant 0 : i32
    %c0_i32_1 = arith.constant 0 : i32
    return %c0_i32, %c0_i32_0 : i32, i32
  }
  func.func @transform_8(%arg0: i32) -> (i32, i32) {
    %c0_i32 = arith.constant 0 : i32
    %c0_i32_0 = arith.constant 0 : i32
    %c0_i32_1 = arith.constant 0 : i32
    return %c0_i32, %c0_i32_0 : i32, i32
  }
  func.func @transform_9(%arg0: i32) -> (i32, i32) {
    %c0_i32 = arith.constant 0 : i32
    %c0_i32_0 = arith.constant 0 : i32
    %c0_i32_1 = arith.constant 0 : i32
    return %c0_i32, %c0_i32_0 : i32, i32
  }
  func.func @transform_10(%arg0: i32) -> (i32, i32) {
    %c0_i32 = arith.constant 0 : i32
    %c0_i32_0 = arith.constant 0 : i32
    return %arg0, %c0_i32 : i32, i32
  }
  func.func @transform_11(%arg0: i32) -> (i32, i32) {
    %c0_i32 = arith.constant 0 : i32
    %c0_i32_0 = arith.constant 0 : i32
    return %arg0, %c0_i32 : i32, i32
  }
}

</mosaic_0001>

<bundles_post_ra>
// kernel: tpu_custom_call.1
= control target key start
LH: loop header
LB: loop body
LE: loop exit
PB: predicated region body
PF: predicated region fallthrough
CT: control target
= control target key end

     0   :  { %17 = vsyncpa [#allocation3], 0  ;;  %s1067_s0 = inlined_call_operand.hbm [shape: f32[8,128], index: 0, kind: input, shape index: {}]   ;;  %s1068_s1 = inlined_call_operand.hbm [shape: f32[8,128], index: 1, kind: input, shape index: {}]   ;;  %s1069_s2 = inlined_call_operand.hbm [shape: f32[128,128], index: 2, kind: input, shape index: {}]   ;;  %s1070_s3 = inlined_call_operand.vmem [shape: f32[1,128], index: 3, kind: input, shape index: {}]   ;;  %s1071_s4 = inlined_call_operand.hbm [shape: f32[128,256], index: 4, kind: input, shape index: {}]   ;;  %s1072_s5 = inlined_call_operand.vmem [shape: f32[1,256], index: 5, kind: input, shape index: {}]   ;;  %s1073_s6 = inlined_call_operand.hbm [shape: f32[128,128], index: 6, kind: input, shape index: {}]   ;;  %s1074_s7 = inlined_call_operand.vmem [shape: f32[1,128], index: 7, kind: input, shape index: {}]   ;;  %s1075_s8 = inlined_call_operand.hbm [shape: f32[128,128], index: 8, kind: input, shape index: {}]   ;;  %s1076_s9 = inlined_call_operand.vmem [shape: f32[1,128], index: 9, kind: input, shape index: {}]   ;;  %s1077_s10 = inlined_call_operand.hbm [shape: f32[8,128], index: 10, kind: output, shape index: {0}]   ;;  %s1078_s11 = inlined_call_operand.hbm [shape: f32[8,256], index: 11, kind: output, shape index: {1}]  }
   0x1   :  { %18 = vsyncpa [#allocation6], 0 }
   0x2   :  { %19 = vsyncpa [#allocation9], 0 }
   0x3   :  { %20 = vsyncpa [#allocation12], 0 }
   0x4   :  { %21 = vsyncpa [#allocation4], 0 }
   0x5   :  { %22 = vsyncpa [#allocation15], 0  ;;  %s902_s17 = smov [#allocation5]   ;;  %s903_s19 = smov [#allocation8]  }
   0x6   :  { %s39_s18 = sshll.u32 %s902_s17, 4  ;;  %s62_s20 = sshll.u32 %s903_s19, 4  ;;  %s40_s18 = int_to_ptr.vmem [resolvable:$true] %s39_s18  ;;  %s63_s20 = int_to_ptr.vmem [resolvable:$true] %s62_s20 }
   0x7   :  { %s738_s21 = scalar_lea.vmem %s40_s18, 128  ;;  %p743_p1 = scmp.lt.s32.totalorder %s40_s18, %s40_s18 }
   0x8   :  { %p739_p0 = scmp.ne.s32.totalorder %s40_s18, %s738_s21  ;;  %p744_p2 = scmp.lt.s32.totalorder %s738_s21, %s738_s21 }
   0xa   :  { %p745_p3 = por %p744_p2, %p743_p1 }
   0xc   :  { %p746_p4 = pnand %p745_p3, %p739_p0 }
   0xe   :  { %749 = shalt.err (!%p746_p4)
}
   0xf   :  { %42 = dma.hbm_to_vmem [thread:$0]  %s1068_s1, 128, %s40_s18, [#allocation6]  }
  0x10   :  { %s758_s24 = scalar_lea.vmem %s63_s20, 4096  ;;  %p763_p6 = scmp.lt.s32.totalorder %s63_s20, %s63_s20 }
  0x11   :  { %p759_p5 = scmp.ne.s32.totalorder %s63_s20, %s758_s24  ;;  %p764_p7 = scmp.lt.s32.totalorder %s758_s24, %s758_s24 }
  0x13   :  { %p765_p8 = por %p764_p7, %p763_p6 }
  0x15   :  { %p766_p9 = pnand %p765_p8, %p759_p5 }
  0x17   :  { %769 = shalt.err (!%p766_p9)
}
  0x18   :  { %s904_s25 = smov 256   ;;  %s905_s26 = smov 16  }
  0x19   :  { %68 = dma.hbm_to_vmem [thread:$0]  %s1071_s4, 4096, %s63_s20, [#allocation9], %s904_s25, %s904_s25, %s905_s26  }
  0x1a   :  { %s906_s29 = smov [#allocation2]   ;;  %s907_s12 = smov [#allocation7]  }
  0x1b   :  { %s29_s30 = sshll.u32 %s906_s29, 4  ;;  %s48_s13 = sshll.u32 %s907_s12, 4  ;;  %s30_s30 = int_to_ptr.vmem [resolvable:$true] %s29_s30  ;;  %s49_s13 = int_to_ptr.vmem [resolvable:$true] %s48_s13 }
  0x1c   :  { %s778_s1 = scalar_lea.vmem %s30_s30, 128  ;;  %p783_p11 = scmp.lt.s32.totalorder %s30_s30, %s30_s30 }
  0x1d   :  { %p779_p10 = scmp.ne.s32.totalorder %s30_s30, %s778_s1  ;;  %p784_p12 = scmp.lt.s32.totalorder %s778_s1, %s778_s1 }
  0x1f   :  { %p785_p13 = por %p784_p12, %p783_p11 }
  0x21   :  { %p786_p0 = pnand %p785_p13, %p779_p10 }
  0x23   :  { %789 = shalt.err (!%p786_p0)
}
  0x24   :  { %32 = dma.hbm_to_vmem [thread:$0]  %s1067_s0, 128, %s30_s30, [#allocation3]  }
  0x25   :  { %s798_s16 = scalar_lea.vmem %s49_s13, 2048  ;;  %p803_p2 = scmp.lt.s32.totalorder %s49_s13, %s49_s13 }
  0x26   :  { %p799_p1 = scmp.ne.s32.totalorder %s49_s13, %s798_s16  ;;  %p804_p3 = scmp.lt.s32.totalorder %s798_s16, %s798_s16 }
  0x28   :  { %p805_p4 = por %p804_p3, %p803_p2 }
  0x2a   :  { %p806_p5 = pnand %p805_p4, %p799_p1 }
  0x2c   :  { %809 = shalt.err (!%p806_p5)
}
  0x2d   :  { %s908_s4 = smov 128   ;;  %s909_s17 = smov 8  }
  0x2e   :  { %54 = dma.hbm_to_vmem [thread:$0]  %s1069_s2, 2048, %s49_s13, [#allocation6], %s908_s4, %s908_s4, %s909_s17  }
  0x2f   :  { %s910_s20 = smov [#allocation10]   ;;  %s911_s22 = smov [#allocation11]  }
  0x30   :  { %s76_s21 = sshll.u32 %s910_s20, 4  ;;  %s90_s23 = sshll.u32 %s911_s22, 4  ;;  %s77_s21 = int_to_ptr.vmem [resolvable:$true] %s76_s21  ;;  %s91_s23 = int_to_ptr.vmem [resolvable:$true] %s90_s23 }
  0x31   :  { %s818_s0 = scalar_lea.vmem %s77_s21, 2048  ;;  %p823_p7 = scmp.lt.s32.totalorder %s77_s21, %s77_s21 }
  0x32   :  { %p819_p6 = scmp.ne.s32.totalorder %s77_s21, %s818_s0  ;;  %p824_p8 = scmp.lt.s32.totalorder %s818_s0, %s818_s0 }
  0x34   :  { %p825_p9 = por %p824_p8, %p823_p7 }
  0x36   :  { %p826_p10 = pnand %p825_p9, %p819_p6 }
  0x38   :  { %829 = shalt.err (!%p826_p10)
}
  0x39   :  { %82 = dma.hbm_to_vmem [thread:$0]  %s1073_s6, 2048, %s77_s21, [#allocation9], %s908_s4, %s908_s4, %s909_s17  }
  0x3a   :  { %s838_s26 = scalar_lea.vmem %s91_s23, 2048  ;;  %p843_p12 = scmp.lt.s32.totalorder %s91_s23, %s91_s23 }
  0x3b   :  { %p839_p11 = scmp.ne.s32.totalorder %s91_s23, %s838_s26  ;;  %p844_p13 = scmp.lt.s32.totalorder %s838_s26, %s838_s26 }
  0x3d   :  { %p845_p0 = por %p844_p13, %p843_p12 }
  0x3f   :  { %p846_p1 = pnand %p845_p0, %p839_p11 }
  0x41   :  { %849 = shalt.err (!%p846_p1)
}
  0x42   :  { %96 = dma.hbm_to_vmem [thread:$0]  %s1075_s8, 2048, %s91_s23, [#allocation12], %s908_s4, %s908_s4, %s909_s17  }
  0x43   :  { %890 = dma.done.wait [#allocation3], 128  }
  0x44   :  { %891 = vsyncadd [#allocation3], 4294967168 }
  0x45   :  { %892 = dma.done.wait [#allocation6], 2176  }
  0x46   :  { %893 = vsyncadd [#allocation6], 4294965120 }
  0x47   :  { %894 = dma.done.wait [#allocation9], 6144  }
  0x48   :  { %895 = vsyncadd [#allocation9], 4294961152 }
  0x49   :  { %896 = dma.done.wait [#allocation12], 2048  }
  0x4a   :  { %897 = vsyncadd [#allocation12], 4294965248  ;;  %v912_v0 = vmov 0.0   ;;  %vm913_vm0 = vmmov 0   ;;  %v133_v1 = vld [vmem:[#allocation7 + $0x78] sm:$0xff]  ;;  %v132_v2 = vld [vmem:[#allocation7 + $0x70] sm:$0xff] }
  0x4b   :  { %609 = vmatprep.subr.mxu0 %v912_v0  ;;  %641 = vmatprep.mubr.msk.f32.mxu0 %vm913_vm0, %v912_v0  ;;  %v131_v3 = vld [vmem:[#allocation7 + $0x68] sm:$0xff]  ;;  %v130_v4 = vld [vmem:[#allocation7 + $0x60] sm:$0xff]  ;;  %v129_v5 = vld [vmem:[#allocation7 + $0x58] sm:$0xff]  ;;  %s914_s30 = smov [#allocation14]  }
  0x4c   :  { %320 = vmatprep.mubr.f32.mxu1 %v912_v0  ;;  %610 = vmatpush3.msra.mxu0 %v133_v1  ;;  %v243_v6 = vld [vmem:[#allocation8 + $0xf8] sm:$0xff]  ;;  %v242_v7 = vld [vmem:[#allocation8 + $0xf0] sm:$0xff]  ;;  %v241_v8 = vld [vmem:[#allocation8 + $0xe8] sm:$0xff]  ;;  %s539_s12 = sshll.u32 %s914_s30, 4  ;;  %s540_s12 = int_to_ptr.vmem [resolvable:$true] %s539_s12 }
  0x4d   :  { %611 = vmatprep.subr.mxu0 %v912_v0  ;;  %256 = vmatprep.subr.mxu1 %v243_v6  ;;  %v240_v9 = vld [vmem:[#allocation8 + $0xe0] sm:$0xff]  ;;  %v239_v10 = vld [vmem:[#allocation8 + $0xd8] sm:$0xff]  ;;  %v128_v11 = vld [vmem:[#allocation7 + $0x50] sm:$0xff]  ;;  %s850_s13 = scalar_lea.vmem %s540_s12, 256  ;;  %p855_p3 = scmp.lt.s32.totalorder %s540_s12, %s540_s12 }
  0x4e   :  { %612 = vmatpush3.msra.mxu0 %v132_v2  ;;  %257 = vmatpush1.msra.mxu1 %v242_v7  ;;  %v238_v12 = vld [vmem:[#allocation8 + $0xd0] sm:$0xff]  ;;  %v237_v13 = vld [vmem:[#allocation8 + $0xc8] sm:$0xff]  ;;  %v236_v15 = vld [vmem:[#allocation8 + $0xc0] sm:$0xff]  ;;  %p851_p2 = scmp.ne.s32.totalorder %s540_s12, %s850_s13  ;;  %p856_p4 = scmp.lt.s32.totalorder %s850_s13, %s850_s13 }
  0x4f   :  { %613 = vmatprep.subr.mxu0 %v912_v0  ;;  %258 = vmatprep.subr.mxu1 %v241_v8  ;;  %v127_v14 = vld [vmem:[#allocation7 + $0x48] sm:$0xff]  ;;  %v235_v16 = vld [vmem:[#allocation8 + $0xb8] sm:$0xff]  ;;  %v126_v17 = vld [vmem:[#allocation7 + $0x40] sm:$0xff] }
  0x50   :  { %614 = vmatpush3.msra.mxu0 %v131_v3  ;;  %259 = vmatpush1.msra.mxu1 %v240_v9  ;;  %v234_v18 = vld [vmem:[#allocation8 + $0xb0] sm:$0xff]  ;;  %v233_v19 = vld [vmem:[#allocation8 + $0xa8] sm:$0xff]  ;;  %v125_v20 = vld [vmem:[#allocation7 + $0x38] sm:$0xff]  ;;  %p857_p5 = por %p856_p4, %p855_p3 }
  0x51   :  { %615 = vmatprep.subr.mxu0 %v912_v0  ;;  %260 = vmatprep.subr.mxu1 %v239_v10  ;;  %v232_v21 = vld [vmem:[#allocation8 + $0xa0] sm:$0xff]  ;;  %v231_v22 = vld [vmem:[#allocation8 + $0x98] sm:$0xff]  ;;  %v124_v23 = vld [vmem:[#allocation7 + $0x30] sm:$0xff] }
  0x52   :  { %616 = vmatpush3.msra.mxu0 %v130_v4  ;;  %261 = vmatpush1.msra.mxu1 %v238_v12  ;;  %v230_v24 = vld [vmem:[#allocation8 + $0x90] sm:$0xff]  ;;  %v229_v25 = vld [vmem:[#allocation8 + $0x88] sm:$0xff]  ;;  %v228_v27 = vld [vmem:[#allocation8 + $0x80] sm:$0xff]  ;;  %p858_p6 = pnand %p857_p5, %p851_p2 }
  0x53   :  { %617 = vmatprep.subr.mxu0 %v912_v0  ;;  %262 = vmatprep.subr.mxu1 %v237_v13  ;;  %v123_v26 = vld [vmem:[#allocation7 + $0x28] sm:$0xff]  ;;  %v227_v28 = vld [vmem:[#allocation8 + $0x78] sm:$0xff]  ;;  %v122_v29 = vld [vmem:[#allocation7 + $0x20] sm:$0xff] }
  0x54   :  { %618 = vmatpush3.msra.mxu0 %v129_v5  ;;  %263 = vmatpush1.msra.mxu1 %v236_v15  ;;  %v226_v30 = vld [vmem:[#allocation8 + $0x70] sm:$0xff]  ;;  %v225_v31 = vld [vmem:[#allocation8 + $0x68] sm:$0xff]  ;;  %v121_v32 = vld [vmem:[#allocation7 + $0x18] sm:$0xff] }
  0x55   :  { %619 = vmatprep.subr.mxu0 %v912_v0  ;;  %264 = vmatprep.subr.mxu1 %v235_v16  ;;  %v224_v33 = vld [vmem:[#allocation8 + $0x60] sm:$0xff]  ;;  %v223_v34 = vld [vmem:[#allocation8 + $0x58] sm:$0xff]  ;;  %v120_v35 = vld [vmem:[#allocation7 + $0x10] sm:$0xff] }
  0x56   :  { %620 = vmatpush3.msra.mxu0 %v128_v11  ;;  %265 = vmatpush1.msra.mxu1 %v234_v18  ;;  %v222_v36 = vld [vmem:[#allocation8 + $0x50] sm:$0xff]  ;;  %v221_v37 = vld [vmem:[#allocation8 + $0x48] sm:$0xff]  ;;  %v220_v39 = vld [vmem:[#allocation8 + $0x40] sm:$0xff] }
  0x57   :  { %621 = vmatprep.subr.mxu0 %v912_v0  ;;  %266 = vmatprep.subr.mxu1 %v233_v19  ;;  %v119_v38 = vld [vmem:[#allocation7 + $0x8] sm:$0xff]  ;;  %v219_v40 = vld [vmem:[#allocation8 + $0x38] sm:$0xff]  ;;  %v118_v41 = vld [vmem:[#allocation7] sm:$0xff] }
  0x58   :  { %622 = vmatpush3.msra.mxu0 %v127_v14  ;;  %267 = vmatpush1.msra.mxu1 %v232_v21  ;;  %v218_v42 = vld [vmem:[#allocation8 + $0x30] sm:$0xff]  ;;  %v217_v44 = vld [vmem:[#allocation8 + $0x28] sm:$0xff]  ;;  %v216_v45 = vld [vmem:[#allocation8 + $0x20] sm:$0xff]  ;;  %v246_v21 = vlaneseq }
  0x59   :  { %623 = vmatprep.subr.mxu0 %v912_v0  ;;  %268 = vmatprep.subr.mxu1 %v231_v22  ;;  %v117_v43 = vld [vmem:[#allocation2] sm:$0xff]  ;;  %v215_v46 = vld [vmem:[#allocation8 + $0x18] sm:$0xff]  ;;  %v213_v48 = vld [vmem:[#allocation8 + $0x8] sm:$0xff] }
  0x5a   :  { %624 = vmatpush3.msra.mxu0 %v126_v17  ;;  %269 = vmatpush1.msra.mxu1 %v230_v24  ;;  %v214_v47 = vld [vmem:[#allocation8 + $0x10] sm:$0xff]  ;;  %v212_v49 = vld [vmem:[#allocation8] sm:$0xff]  ;;  %v348_v50 = vld [vmem:[#allocation10 + $0x78] sm:$0xff]  ;;  %v247_v22 = vshrl.u32 %v246_v21, 7 }
  0x5b   :  { %625 = vmatprep.subr.mxu0 %v912_v0  ;;  %270 = vmatprep.subr.mxu1 %v229_v25  ;;  %v347_v51 = vld [vmem:[#allocation10 + $0x70] sm:$0xff]  ;;  %v346_v57 = vld [vmem:[#allocation10 + $0x68] sm:$0xff]  ;;  %v345_v58 = vld [vmem:[#allocation10 + $0x60] sm:$0xff] }
  0x5c   :  { %626 = vmatpush3.msra.mxu0 %v125_v20  ;;  %271 = vmatpush1.msra.mxu1 %v228_v27  ;;  %v555_v52 = vld [vmem:[%s1070_s3] ss:$0 sm:$0xff]  ;;  %v344_v59 = vld [vmem:[#allocation10 + $0x58] sm:$0xff]  ;;  %v342_v61 = vld [vmem:[#allocation10 + $0x48] sm:$0xff]  ;;  %v252_v25 = vsub.s32 1, %v247_v22 }
  0x5d   :  { %627 = vmatprep.subr.mxu0 %v912_v0  ;;  %272 = vmatprep.subr.mxu1 %v227_v28  ;;  %v343_v60 = vld [vmem:[#allocation10 + $0x50] sm:$0xff]  ;;  %v341_v62 = vld [vmem:[#allocation10 + $0x40] sm:$0xff]  ;;  %v340_v63 = vld [vmem:[#allocation10 + $0x38] sm:$0xff] }
  0x5e   :  { %628 = vmatpush3.msra.mxu0 %v124_v23  ;;  %273 = vmatpush1.msra.mxu1 %v226_v30  ;;  %v339_v1 = vld [vmem:[#allocation10 + $0x30] sm:$0xff]  ;;  %v338_v2 = vld [vmem:[#allocation10 + $0x28] sm:$0xff]  ;;  %v337_v3 = vld [vmem:[#allocation10 + $0x20] sm:$0xff]  ;;  %v248_v23 = vsub.s32 0, %v247_v22 }
  0x5f   :  { %629 = vmatprep.subr.mxu0 %v912_v0  ;;  %274 = vmatprep.subr.mxu1 %v225_v31  ;;  %v336_v4 = vld [vmem:[#allocation10 + $0x18] sm:$0xff]  ;;  %v335_v5 = vld [vmem:[#allocation10 + $0x10] sm:$0xff]  ;;  %v334_v6 = vld [vmem:[#allocation10 + $0x8] sm:$0xff] }
  0x60   :  { %630 = vmatpush3.msra.mxu0 %v123_v26  ;;  %275 = vmatpush1.msra.mxu1 %v224_v33  ;;  %v333_v7 = vld [vmem:[#allocation10] sm:$0xff]  ;;  %v442_v8 = vld [vmem:[#allocation11 + $0x78] sm:$0xff]  ;;  %v441_v9 = vld [vmem:[#allocation11 + $0x70] sm:$0xff] }
  0x61   :  { %631 = vmatprep.subr.mxu0 %v912_v0  ;;  %276 = vmatprep.subr.mxu1 %v223_v34  ;;  %v440_v10 = vld [vmem:[#allocation11 + $0x68] sm:$0xff]  ;;  %v439_v11 = vld [vmem:[#allocation11 + $0x60] sm:$0xff]  ;;  %v438_v12 = vld [vmem:[#allocation11 + $0x58] sm:$0xff] }
  0x62   :  { %632 = vmatpush3.msra.mxu0 %v122_v29  ;;  %277 = vmatpush1.msra.mxu1 %v222_v36  ;;  %v437_v13 = vld [vmem:[#allocation11 + $0x50] sm:$0xff]  ;;  %v436_v14 = vld [vmem:[#allocation11 + $0x48] sm:$0xff]  ;;  %v435_v15 = vld [vmem:[#allocation11 + $0x40] sm:$0xff] }
  0x63   :  { %633 = vmatprep.subr.mxu0 %v912_v0  ;;  %278 = vmatprep.subr.mxu1 %v221_v37  ;;  %v434_v16 = vld [vmem:[#allocation11 + $0x38] sm:$0xff]  ;;  %v433_v17 = vld [vmem:[#allocation11 + $0x30] sm:$0xff]  ;;  %v432_v18 = vld [vmem:[#allocation11 + $0x28] sm:$0xff] }
  0x64   :  { %634 = vmatpush3.msra.mxu0 %v121_v32  ;;  %279 = vmatpush1.msra.mxu1 %v220_v39  ;;  %v431_v19 = vld [vmem:[#allocation11 + $0x20] sm:$0xff]  ;;  %v430_v20 = vld [vmem:[#allocation11 + $0x18] sm:$0xff]  ;;  %v244_v24 = vld [vmem:[%s1072_s5] sm:$0x3] }
  0x65   :  { %635 = vmatprep.subr.mxu0 %v912_v0  ;;  %280 = vmatprep.subr.mxu1 %v219_v40  ;;  %v249_v26 = vrot.slane %v244_v24, %v248_v23  ;;  %v253_v27 = vrot.slane %v244_v24, %v252_v25  ;;  %v330_v34 = vld [vmem:[#allocation5] sm:$0xff]  ;;  %v428_v39 = vld [vmem:[#allocation11 + $0x8] sm:$0xff]  ;;  %v427_v40 = vld [vmem:[#allocation11] sm:$0xff] }
  0x66   :  { %636 = vmatpush3.msra.mxu0 %v120_v35  ;;  %281 = vmatpush1.msra.mxu1 %v218_v42 }
  0x67   :  { %637 = vmatprep.subr.mxu0 %v912_v0  ;;  %282 = vmatprep.subr.mxu1 %v217_v44 }
  0x68   :  { %638 = vmatpush3.msra.mxu0 %v119_v38  ;;  %283 = vmatpush1.msra.mxu1 %v216_v45  ;;  %v429_v38 = vld [vmem:[#allocation11 + $0x10] sm:$0xff] }
  0x69   :  { %639 = vmatprep.subr.mxu0 %v912_v0  ;;  %284 = vmatprep.subr.mxu1 %v215_v46 }
  0x6a   :  { %640 = vmatpush3.msra.mxu0 %v118_v41  ;;  %285 = vmatpush1.msra.mxu1 %v214_v47  ;;  %v556_v41 = vld [vmem:[%s1074_s7] ss:$0 sm:$0xff] }
  0x6b   :  { %642 = vmatmul.mubr.f32.vlgmr.msra.gmra.mxu0 %v117_v43  ;;  %644 = vmatprep.subr.mxu0 %v912_v0 }
  0x6c   :  { %676 = vmatprep.mubr.msk.f32.mxu0 %vm913_vm0, %v912_v0  ;;  %286 = vmatprep.subr.mxu1 %v213_v48 }
  0x6d   :  { %287 = vmatpush1.msra.mxu1 %v212_v49  ;;  %645 = vmatpush3.msra.mxu0 %v348_v50 }
  0x6e   :  { %679 = vmatprep.subr.mxu1 %v912_v0  ;;  %646 = vmatprep.subr.mxu0 %v912_v0 }
  0x6f   :  { %647 = vmatpush3.msra.mxu0 %v347_v51 }
  0x70   :  { %648 = vmatprep.subr.mxu0 %v912_v0 }
  0x71   :  { %649 = vmatpush3.msra.mxu0 %v346_v57 }
  0x72   :  { %650 = vmatprep.subr.mxu0 %v912_v0 }
  0x73   :  { %651 = vmatpush3.msra.mxu0 %v345_v58 }
  0x74   :  { %652 = vmatprep.subr.mxu0 %v912_v0 }
  0x75   :  { %653 = vmatpush3.msra.mxu0 %v344_v59 }
  0x76   :  { %654 = vmatprep.subr.mxu0 %v912_v0 }
  0x77   :  { %655 = vmatpush3.msra.mxu0 %v343_v60 }
  0x78   :  { %656 = vmatprep.subr.mxu0 %v912_v0 }
  0x79   :  { %657 = vmatpush3.msra.mxu0 %v342_v61 }
  0x7a   :  { %658 = vmatprep.subr.mxu0 %v912_v0 }
  0x7b   :  { %659 = vmatpush3.msra.mxu0 %v341_v62 }
  0x7c   :  { %660 = vmatprep.subr.mxu0 %v912_v0 }
  0x7d   :  { %661 = vmatpush3.msra.mxu0 %v340_v63 }
  0x7e   :  { %662 = vmatprep.subr.mxu0 %v912_v0 }
  0x7f   :  { %663 = vmatpush3.msra.mxu0 %v339_v1 }
  0x80   :  { %664 = vmatprep.subr.mxu0 %v912_v0 }
  0x81   :  { %665 = vmatpush3.msra.mxu0 %v338_v2 }
  0x82   :  { %666 = vmatprep.subr.mxu0 %v912_v0 }
  0x83   :  { %667 = vmatpush3.msra.mxu0 %v337_v3 }
  0x84   :  { %668 = vmatprep.subr.mxu0 %v912_v0 }
  0x85   :  { %669 = vmatpush3.msra.mxu0 %v336_v4 }
  0x86   :  { %670 = vmatprep.subr.mxu0 %v912_v0 }
  0x87   :  { %671 = vmatpush3.msra.mxu0 %v335_v5 }
  0x88   :  { %672 = vmatprep.subr.mxu0 %v912_v0 }
  0x89   :  { %673 = vmatpush3.msra.mxu0 %v334_v6 }
  0x8a   :  { %674 = vmatprep.subr.mxu0 %v912_v0 }
  0x8b   :  { %675 = vmatpush3.msra.mxu0 %v333_v7 }
 0x12b   :  { %v207_v53 = vpop.f32.mrf.mxu0 }
 0x12c   :  { %v208_v54 = vadd.f32 %v555_v52, %v207_v53 }
 0x12d   :  { %v643_v55 = vpop.f32.mrf.mxu0 }
 0x12e   :  { %v211_v56 = vmax.f32 %v208_v54, 0.0 }
 0x130   :  { %321 = vmatmul.mubr.f32.vlgmr.msra.gmra.mxu1 %v211_v56 }
 0x131   :  { %711 = vmatprep.mubr.msk.f32.mxu1 %vm913_vm0, %v912_v0  ;;  %680 = vmatpush3.msra.mxu1 %v442_v8 }
 0x132   :  { %681 = vmatprep.subr.mxu1 %v912_v0 }
 0x133   :  { %682 = vmatpush3.msra.mxu1 %v441_v9 }
 0x134   :  { %683 = vmatprep.subr.mxu1 %v912_v0 }
 0x135   :  { %684 = vmatpush3.msra.mxu1 %v440_v10 }
 0x136   :  { %685 = vmatprep.subr.mxu1 %v912_v0 }
 0x137   :  { %686 = vmatpush3.msra.mxu1 %v439_v11 }
 0x138   :  { %687 = vmatprep.subr.mxu1 %v912_v0 }
 0x139   :  { %688 = vmatpush3.msra.mxu1 %v438_v12 }
 0x13a   :  { %689 = vmatprep.subr.mxu1 %v912_v0 }
 0x13b   :  { %690 = vmatpush3.msra.mxu1 %v437_v13 }
 0x13c   :  { %691 = vmatprep.subr.mxu1 %v912_v0 }
 0x13d   :  { %692 = vmatpush3.msra.mxu1 %v436_v14 }
 0x13e   :  { %693 = vmatprep.subr.mxu1 %v912_v0 }
 0x13f   :  { %694 = vmatpush3.msra.mxu1 %v435_v15 }
 0x140   :  { %695 = vmatprep.subr.mxu1 %v912_v0 }
 0x141   :  { %696 = vmatpush3.msra.mxu1 %v434_v16 }
 0x142   :  { %697 = vmatprep.subr.mxu1 %v912_v0 }
 0x143   :  { %698 = vmatpush3.msra.mxu1 %v433_v17 }
 0x144   :  { %699 = vmatprep.subr.mxu1 %v912_v0 }
 0x145   :  { %700 = vmatpush3.msra.mxu1 %v432_v18 }
 0x146   :  { %701 = vmatprep.subr.mxu1 %v912_v0 }
 0x147   :  { %702 = vmatpush3.msra.mxu1 %v431_v19 }
 0x148   :  { %703 = vmatprep.subr.mxu1 %v912_v0 }
 0x149   :  { %704 = vmatpush3.msra.mxu1 %v430_v20 }
 0x14a   :  { %705 = vmatprep.subr.mxu1 %v912_v0 }
 0x14b   :  { %706 = vmatpush3.msra.mxu1 %v429_v38 }
 0x14c   :  { %707 = vmatprep.subr.mxu1 %v912_v0 }
 0x14d   :  { %708 = vmatpush3.msra.mxu1 %v428_v39 }
 0x14e   :  { %709 = vmatprep.subr.mxu1 %v912_v0 }
 0x14f   :  { %710 = vmatpush3.msra.mxu1 %v427_v40 }
 0x1f0   :  { %v322_v28 = vpop.f32.mrf.mxu1 }
 0x1f1   :  { %v323_v29 = vadd.f32 %v322_v28, %v249_v26 }
 0x1f2   :  { %v324_v30 = vpop.f32.mrf.mxu1 }
 0x1f3   :  { %521 = vst [vmem:[#allocation14] sm:$0xff] %v323_v29  ;;  %v325_v31 = vadd.f32 %v324_v30, %v253_v27 }
 0x1f5   :  { %v327_v32 = vmul.f32 0.5, %v325_v31  ;;  %522 = vst [vmem:[#allocation14 + $0x8] sm:$0xff] %v325_v31 }
 0x1f7   :  { %v328_v33 = vmul.f32 1.442695, %v327_v32 }
 0x1f9   :  { %728 = vpow2.f32 %v328_v33 }
 0x206   :  { %v729_v35 = vpop.eup %728 }
 0x207   :  { %v331_v36 = vmul.f32 %v729_v35, %v330_v34 }
 0x209   :  { %v332_v37 = vadd.f32 %v331_v36, %v323_v29 }
 0x20b   :  { %677 = vmatmul.mubr.f32.vlgmr.msra.gmra.mxu0 %v332_v37 }
 0x2cb   :  { %v422_v42 = vpop.f32.mrf.mxu0 }
 0x2cc   :  { %v423_v43 = vadd.f32 %v556_v41, %v422_v42 }
 0x2cd   :  { %v678_v44 = vpop.f32.mrf.mxu0 }
 0x2ce   :  { %v426_v45 = vmax.f32 %v423_v43, 0.0 }
 0x2d0   :  { %712 = vmatmul.mubr.f32.vlgmr.msra.gmra.mxu1 %v426_v45 }
 0x2d1   :  { %861 = shalt.err (!%p858_p6)
}
 0x2d2   :  { %542 = dma.vmem_to_hbm [thread:$0]  %s540_s12, 256, %s1078_s11, [#allocation15]   ;;  %v557_v0 = vld [vmem:[%s1076_s9] ss:$0 sm:$0xff] }
 0x2d3   :  { %s915_s16 = smov [#allocation13]  }
 0x2d4   :  { %s529_s4 = sshll.u32 %s915_s16, 4  ;;  %s530_s4 = int_to_ptr.vmem [resolvable:$true] %s529_s4 }
 0x2d5   :  { %s870_s17 = scalar_lea.vmem %s530_s4, 128  ;;  %p875_p8 = scmp.lt.s32.totalorder %s530_s4, %s530_s4 }
 0x2d6   :  { %p871_p7 = scmp.ne.s32.totalorder %s530_s4, %s870_s17  ;;  %p876_p9 = scmp.lt.s32.totalorder %s870_s17, %s870_s17 }
 0x2d8   :  { %p877_p10 = por %p876_p9, %p875_p8 }
 0x2da   :  { %p878_p11 = pnand %p877_p10, %p871_p7 }
 0x390   :  { %v516_v46 = vpop.f32.mrf.mxu1 }
 0x391   :  { %v517_v47 = vadd.f32 %v557_v0, %v516_v46 }
 0x392   :  { %v713_v48 = vpop.f32.mrf.mxu1 }
 0x393   :  { %520 = vst [vmem:[#allocation13] sm:$0xff] %v517_v47 }
 0x394   :  { %881 = shalt.err (!%p878_p11)
}
 0x395   :  { %532 = dma.vmem_to_hbm [thread:$0]  %s530_s4, 128, %s1077_s10, [#allocation4]  }
 0x396   :  { %898 = dma.done.wait [#allocation4], 128  }
 0x397   :  { %899 = vsyncadd [#allocation4], 4294967168 }
 0x398   :  { %900 = dma.done.wait [#allocation15], 256  }
 0x399   :  { %901 = vsyncadd [#allocation15], 4294967040 }
 0x39a   :  { %549 = vsyncpa [#allocation3], 1 }
 0x39b   :  { %550 = vsyncpa [#allocation6], 1 }
 0x39c   :  { %551 = vsyncpa [#allocation9], 1 }
 0x39d   :  { %552 = vsyncpa [#allocation12], 1 }
 0x39e   :  { %553 = vsyncpa [#allocation4], 1 }
 0x39f   :  { %554 = vsyncpa [#allocation15], 1 }

</bundles_post_ra>
